<compile_context>
chip_gen: v6e
topology: v6e:2x2x1
jax: 0.10.0
libtpu: 0.0.40
codegen_flags: <defaults>
</compile_context>

<pallas_src>
import jax
import jax.numpy as jnp
from jax.experimental import pallas as pl
from jax.experimental.pallas import tpu as pltpu


def _round_up(x, m):
    return ((x + m - 1) // m) * m


def _cdiv(a, b):
    return -(-a // b)


# ----------------------------------------------------------------------------
# Kernels
# ----------------------------------------------------------------------------
def _outconv_kernel_vpu(x_ref, w_ref, b_ref, o_ref):
    """Tiny-channel path: unrolled broadcast-FMA on the VPU.

    x_ref: (N_b, C_in, T)     VMEM, pixels on lanes
    w_ref: (C_out * C_in,)    SMEM, f32 scalars
    b_ref: (C_out,)           SMEM, f32 scalars
    o_ref: (N_b, C_out, T)    VMEM, lane-dense output tile
    """
    _, c_in, _ = x_ref.shape
    c_out = o_ref.shape[1]
    # Load each input channel once (re-used across all output channels).
    xs = [x_ref[:, c, :].astype(jnp.float32) for c in range(c_in)]
    for o in range(c_out):
        acc = xs[0] * w_ref[o * c_in]
        for c in range(1, c_in):
            acc = acc + xs[c] * w_ref[o * c_in + c]
        o_ref[:, o, :] = (acc + b_ref[o]).astype(o_ref.dtype)


def _outconv_kernel_mxu(x_ref, w_ref, b_ref, o_ref):
    """General path: per-image MXU matmul  W (C_out,C_in) @ x (C_in, T)."""
    w = w_ref[...]
    b = b_ref[...]
    for n in range(x_ref.shape[0]):
        acc = jnp.dot(w, x_ref[n], preferred_element_type=jnp.float32)
        o_ref[n] = (acc + b).astype(o_ref.dtype)


# ----------------------------------------------------------------------------
# Tiling heuristic
# ----------------------------------------------------------------------------
def _choose_tiling(N, C_in, C_out, HW, itemsize):
    TARGET_BLOCK_BYTES = 2 * 1024 * 1024   # in+out bytes per grid step
    MAX_BLOCK_BYTES = 8 * 1024 * 1024      # 2x double-buffered WS stays < ~20 MiB (v7x-safe)
    bpp = (C_in + C_out) * itemsize        # bytes per pixel column (input + output)

    tile_hw = (TARGET_BLOCK_BYTES // bpp) // 128 * 128
    tile_hw = max(tile_hw, 512)            # tiny blocks are pure per-step overhead
    cap = max(128, (MAX_BLOCK_BYTES // bpp) // 128 * 128)
    tile_hw = min(tile_hw, cap)
    tile_hw = min(tile_hw, _round_up(HW, 128))   # never wider than the pixel axis
    tile_hw = max(tile_hw, 128)

    hw_steps = _cdiv(HW, tile_hw)

    # Fold several batch images into one block when a single tile covers HW,
    # but keep >= 2 total grid steps so both v7x TensorCores get work.
    n_b = 1
    if hw_steps == 1 and N > 1:
        per_image = bpp * tile_hw
        max_fold = max(1, int(TARGET_BLOCK_BYTES // per_image))
        for cand in range(min(max_fold, N // 2), 0, -1):
            if N % cand == 0:
                n_b = cand
                break

    # If the grid still collapsed to a single step, split the pixel axis.
    if (N // n_b) * hw_steps < 2 and HW > 128:
        tile_hw = max(128, _round_up(_cdiv(HW, 2), 128))
        hw_steps = _cdiv(HW, tile_hw)

    return n_b, tile_hw, hw_steps


# ----------------------------------------------------------------------------
# Wrapper
# ----------------------------------------------------------------------------
def outconv_pallas(x_nchw, weight, bias):
    """1x1 conv (nn.Conv2d(in_ch, out_ch, 1)) forward.

    x_nchw: (N, C_in, H, W)
    weight: (C_out, C_in, 1, 1)   -- PyTorch conv weight layout
    bias:   (C_out,)
    returns (N, C_out, H, W)
    """
    N, C_in, H, W = x_nchw.shape
    C_out = weight.shape[0]
    HW = H * W
    itemsize = jnp.dtype(x_nchw.dtype).itemsize

    n_b, tile_hw, hw_steps = _choose_tiling(N, C_in, C_out, HW, itemsize)

    # NCHW -> (N, C_in, H*W): pure reshape, no HBM data movement.
    x3 = x_nchw.reshape(N, C_in, HW)

    use_vpu = (C_in <= 8 and C_out <= 8)
    if use_vpu:
        kernel = _outconv_kernel_vpu
        w_in = weight.reshape(C_out * C_in).astype(jnp.float32)
        b_in = bias.reshape(C_out).astype(jnp.float32)
        w_spec = pl.BlockSpec(memory_space=pltpu.MemorySpace.SMEM)
        b_spec = pl.BlockSpec(memory_space=pltpu.MemorySpace.SMEM)
    else:
        kernel = _outconv_kernel_mxu
        w_in = weight.reshape(C_out, C_in).astype(x_nchw.dtype)
        b_in = bias.reshape(C_out, 1).astype(jnp.float32)
        w_spec = pl.BlockSpec((C_out, C_in), lambda n, t: (0, 0))
        b_spec = pl.BlockSpec((C_out, 1), lambda n, t: (0, 0))

    grid = (N // n_b, hw_steps)

    bytes_accessed = (
        x3.size * itemsize
        + N * C_out * HW * itemsize
        + w_in.size * jnp.dtype(w_in.dtype).itemsize
        + b_in.size * jnp.dtype(b_in.dtype).itemsize
    )

    out3 = pl.pallas_call(
        kernel,
        out_shape=jax.ShapeDtypeStruct((N, C_out, HW), x_nchw.dtype),
        grid_spec=pltpu.PrefetchScalarGridSpec(
            num_scalar_prefetch=0,
            grid=grid,
            in_specs=[
                pl.BlockSpec((n_b, C_in, tile_hw), lambda n, t: (n, 0, t)),
                w_spec,
                b_spec,
            ],
            out_specs=pl.BlockSpec((n_b, C_out, tile_hw), lambda n, t: (n, 0, t)),
        ),
        compiler_params=pltpu.CompilerParams(
            dimension_semantics=("parallel", "parallel"),
            vmem_limit_bytes=32 * 1024 * 1024,
        ),
        cost_estimate=pl.CostEstimate(
            flops=2 * N * HW * C_in * C_out,
            transcendentals=0,
            bytes_accessed=int(bytes_accessed),
        ),
    )(x3, w_in, b_in)

    return out3.reshape(N, C_out, H, W)


def _reference(x_nchw, weight, bias):
    # Pure-JAX reference: 1x1 conv == channel-dim einsum + bias.
    w = weight.reshape(weight.shape[0], weight.shape[1])  # (C_out, C_in)
    y = jnp.einsum("nchw,oc->nohw", x_nchw, w)
    return y + bias.reshape(1, -1, 1, 1)


if __name__ == "__main__":
    key = jax.random.PRNGKey(0)
    k1, k2, k3, k4 = jax.random.split(key, 4)

    N, C_in, C_out = 2, 4, 3

    # Deterministic synthetic parameters (shapes match nn.Conv2d(in_ch, out_ch, 1)).
    weight = jax.random.normal(k2, (C_out, C_in, 1, 1), dtype=jnp.float32) * 0.1
    bias = jax.random.normal(k3, (C_out,), dtype=jnp.float32) * 0.1

    # Case 1: tile-aligned spatial size (16x16 -> HW=256).
    x1 = jax.random.normal(k1, (N, C_in, 16, 16), dtype=jnp.float32)
    y1 = jax.block_until_ready(outconv_pallas(x1, weight, bias))
    assert y1.shape == (N, C_out, 16, 16)
    assert jnp.allclose(y1, _reference(x1, weight, bias), atol=1e-5, rtol=1e-5)

    # Case 2: ragged spatial size (10x13 -> HW=130; the pixel tile overhangs
    # and the overhanging output lanes are masked on writeback).
    x2 = jax.random.normal(k4, (N, C_in, 10, 13), dtype=jnp.float32)
    y2 = jax.block_until_ready(outconv_pallas(x2, weight, bias))
    assert y2.shape == (N, C_out, 10, 13)
    assert jnp.allclose(y2, _reference(x2, weight, bias), atol=1e-5, rtol=1e-5)

    print("KERNEL_OK")
</pallas_src>

<mosaic_0001>
module attributes {stable_mosaic.version = 11 : i64} {
  func.func @_outconv_kernel_vpu(%arg0: i32, %arg1: i32, %arg2: memref<1x4x256xf32, #tpu.memory_space<vmem>>, %arg3: memref<12xf32, #tpu.memory_space<smem>>, %arg4: memref<3xf32, #tpu.memory_space<smem>>, %arg5: memref<1x3x256xf32, #tpu.memory_space<vmem>>) attributes {dimension_semantics = [#tpu.dimension_semantics<parallel>, #tpu.dimension_semantics<parallel>], iteration_bounds = array<i64: 2, 1>, scalar_prefetch = 0 : i64, scratch_operands = 0 : i64, tpu.core_type = #tpu.core_type<tc>, window_params = [{transform_indices = @transform_0, window_bounds = array<i64: 1, 4, 256>}, {transform_indices = @transform_1, window_bounds = array<i64: 12>}, {transform_indices = @transform_2, window_bounds = array<i64: 3>}, {transform_indices = @transform_3, window_bounds = array<i64: 1, 3, 256>}]} {
    %c0 = arith.constant 0 : index
    %c0_0 = arith.constant 0 : index
    %c0_1 = arith.constant 0 : index
    %0 = vector.load %arg2[%c0, %c0_0, %c0_1] : memref<1x4x256xf32, #tpu.memory_space<vmem>>, vector<1x1x256xf32>
    %1 = vector.shape_cast %0 : vector<1x1x256xf32> to vector<1x256xf32>
    %c0_2 = arith.constant 0 : index
    %c1 = arith.constant 1 : index
    %c0_3 = arith.constant 0 : index
    %2 = vector.load %arg2[%c0_2, %c1, %c0_3] : memref<1x4x256xf32, #tpu.memory_space<vmem>>, vector<1x1x256xf32>
    %3 = vector.shape_cast %2 : vector<1x1x256xf32> to vector<1x256xf32>
    %c0_4 = arith.constant 0 : index
    %c2 = arith.constant 2 : index
    %c0_5 = arith.constant 0 : index
    %4 = vector.load %arg2[%c0_4, %c2, %c0_5] : memref<1x4x256xf32, #tpu.memory_space<vmem>>, vector<1x1x256xf32>
    %5 = vector.shape_cast %4 : vector<1x1x256xf32> to vector<1x256xf32>
    %c0_6 = arith.constant 0 : index
    %c3 = arith.constant 3 : index
    %c0_7 = arith.constant 0 : index
    %6 = vector.load %arg2[%c0_6, %c3, %c0_7] : memref<1x4x256xf32, #tpu.memory_space<vmem>>, vector<1x1x256xf32>
    %7 = vector.shape_cast %6 : vector<1x1x256xf32> to vector<1x256xf32>
    %c0_8 = arith.constant 0 : index
    %8 = memref.load %arg3[%c0_8] : memref<12xf32, #tpu.memory_space<smem>>
    %9 = vector.broadcast %8 : f32 to vector<1x256xf32>
    %10 = arith.mulf %1, %9 : vector<1x256xf32>
    %c1_9 = arith.constant 1 : index
    %11 = memref.load %arg3[%c1_9] : memref<12xf32, #tpu.memory_space<smem>>
    %12 = vector.broadcast %11 : f32 to vector<1x256xf32>
    %13 = arith.mulf %3, %12 : vector<1x256xf32>
    %14 = arith.addf %10, %13 : vector<1x256xf32>
    %c2_10 = arith.constant 2 : index
    %15 = memref.load %arg3[%c2_10] : memref<12xf32, #tpu.memory_space<smem>>
    %16 = vector.broadcast %15 : f32 to vector<1x256xf32>
    %17 = arith.mulf %5, %16 : vector<1x256xf32>
    %18 = arith.addf %14, %17 : vector<1x256xf32>
    %c3_11 = arith.constant 3 : index
    %19 = memref.load %arg3[%c3_11] : memref<12xf32, #tpu.memory_space<smem>>
    %20 = vector.broadcast %19 : f32 to vector<1x256xf32>
    %21 = arith.mulf %7, %20 : vector<1x256xf32>
    %22 = arith.addf %18, %21 : vector<1x256xf32>
    %c0_12 = arith.constant 0 : index
    %23 = memref.load %arg4[%c0_12] : memref<3xf32, #tpu.memory_space<smem>>
    %24 = vector.broadcast %23 : f32 to vector<1x256xf32>
    %25 = arith.addf %22, %24 : vector<1x256xf32>
    %c0_13 = arith.constant 0 : index
    %c0_14 = arith.constant 0 : index
    %c0_15 = arith.constant 0 : index
    %26 = vector.load %arg5[%c0_13, %c0_14, %c0_15] : memref<1x3x256xf32, #tpu.memory_space<vmem>>, vector<1x1x256xf32>
    %27 = vector.shape_cast %26 : vector<1x1x256xf32> to vector<1x256xf32>
    %28 = vector.shape_cast %25 : vector<1x256xf32> to vector<1x1x256xf32>
    tpu.vector_store %arg5[%c0_13, %c0_14, %c0_15], %28 {strides = array<i32>} : memref<1x3x256xf32, #tpu.memory_space<vmem>>, vector<1x1x256xf32>,
    %c4 = arith.constant 4 : index
    %29 = memref.load %arg3[%c4] : memref<12xf32, #tpu.memory_space<smem>>
    %30 = vector.broadcast %29 : f32 to vector<1x256xf32>
    %31 = arith.mulf %1, %30 : vector<1x256xf32>
    %c5 = arith.constant 5 : index
    %32 = memref.load %arg3[%c5] : memref<12xf32, #tpu.memory_space<smem>>
    %33 = vector.broadcast %32 : f32 to vector<1x256xf32>
    %34 = arith.mulf %3, %33 : vector<1x256xf32>
    %35 = arith.addf %31, %34 : vector<1x256xf32>
    %c6 = arith.constant 6 : index
    %36 = memref.load %arg3[%c6] : memref<12xf32, #tpu.memory_space<smem>>
    %37 = vector.broadcast %36 : f32 to vector<1x256xf32>
    %38 = arith.mulf %5, %37 : vector<1x256xf32>
    %39 = arith.addf %35, %38 : vector<1x256xf32>
    %c7 = arith.constant 7 : index
    %40 = memref.load %arg3[%c7] : memref<12xf32, #tpu.memory_space<smem>>
    %41 = vector.broadcast %40 : f32 to vector<1x256xf32>
    %42 = arith.mulf %7, %41 : vector<1x256xf32>
    %43 = arith.addf %39, %42 : vector<1x256xf32>
    %c1_16 = arith.constant 1 : index
    %44 = memref.load %arg4[%c1_16] : memref<3xf32, #tpu.memory_space<smem>>
    %45 = vector.broadcast %44 : f32 to vector<1x256xf32>
    %46 = arith.addf %43, %45 : vector<1x256xf32>
    %c0_17 = arith.constant 0 : index
    %c1_18 = arith.constant 1 : index
    %c0_19 = arith.constant 0 : index
    %47 = vector.load %arg5[%c0_17, %c1_18, %c0_19] : memref<1x3x256xf32, #tpu.memory_space<vmem>>, vector<1x1x256xf32>
    %48 = vector.shape_cast %47 : vector<1x1x256xf32> to vector<1x256xf32>
    %49 = vector.shape_cast %46 : vector<1x256xf32> to vector<1x1x256xf32>
    tpu.vector_store %arg5[%c0_17, %c1_18, %c0_19], %49 {strides = array<i32>} : memref<1x3x256xf32, #tpu.memory_space<vmem>>, vector<1x1x256xf32>,
    %c8 = arith.constant 8 : index
    %50 = memref.load %arg3[%c8] : memref<12xf32, #tpu.memory_space<smem>>
    %51 = vector.broadcast %50 : f32 to vector<1x256xf32>
    %52 = arith.mulf %1, %51 : vector<1x256xf32>
    %c9 = arith.constant 9 : index
    %53 = memref.load %arg3[%c9] : memref<12xf32, #tpu.memory_space<smem>>
    %54 = vector.broadcast %53 : f32 to vector<1x256xf32>
    %55 = arith.mulf %3, %54 : vector<1x256xf32>
    %56 = arith.addf %52, %55 : vector<1x256xf32>
    %c10 = arith.constant 10 : index
    %57 = memref.load %arg3[%c10] : memref<12xf32, #tpu.memory_space<smem>>
    %58 = vector.broadcast %57 : f32 to vector<1x256xf32>
    %59 = arith.mulf %5, %58 : vector<1x256xf32>
    %60 = arith.addf %56, %59 : vector<1x256xf32>
    %c11 = arith.constant 11 : index
    %61 = memref.load %arg3[%c11] : memref<12xf32, #tpu.memory_space<smem>>
    %62 = vector.broadcast %61 : f32 to vector<1x256xf32>
    %63 = arith.mulf %7, %62 : vector<1x256xf32>
    %64 = arith.addf %60, %63 : vector<1x256xf32>
    %c2_20 = arith.constant 2 : index
    %65 = memref.load %arg4[%c2_20] : memref<3xf32, #tpu.memory_space<smem>>
    %66 = vector.broadcast %65 : f32 to vector<1x256xf32>
    %67 = arith.addf %64, %66 : vector<1x256xf32>
    %c0_21 = arith.constant 0 : index
    %c2_22 = arith.constant 2 : index
    %c0_23 = arith.constant 0 : index
    %68 = vector.load %arg5[%c0_21, %c2_22, %c0_23] : memref<1x3x256xf32, #tpu.memory_space<vmem>>, vector<1x1x256xf32>
    %69 = vector.shape_cast %68 : vector<1x1x256xf32> to vector<1x256xf32>
    %70 = vector.shape_cast %67 : vector<1x256xf32> to vector<1x1x256xf32>
    tpu.vector_store %arg5[%c0_21, %c2_22, %c0_23], %70 {strides = array<i32>} : memref<1x3x256xf32, #tpu.memory_space<vmem>>, vector<1x1x256xf32>,
    return
  }
  func.func @transform_0(%arg0: i32, %arg1: i32) -> (i32, i32, i32) {
    %c0_i32 = arith.constant 0 : i32
    %c0_i32_0 = arith.constant 0 : i32
    return %arg0, %c0_i32, %arg1 : i32, i32, i32
  }
  func.func @transform_1(%arg0: i32, %arg1: i32) -> i32 {
    %c0_i32 = arith.constant 0 : i32
    %c0_i32_0 = arith.constant 0 : i32
    return %c0_i32 : i32
  }
  func.func @transform_2(%arg0: i32, %arg1: i32) -> i32 {
    %c0_i32 = arith.constant 0 : i32
    %c0_i32_0 = arith.constant 0 : i32
    return %c0_i32 : i32
  }
  func.func @transform_3(%arg0: i32, %arg1: i32) -> (i32, i32, i32) {
    %c0_i32 = arith.constant 0 : i32
    %c0_i32_0 = arith.constant 0 : i32
    return %arg0, %c0_i32, %arg1 : i32, i32, i32
  }
}

</mosaic_0001>

<bundles_post_ra>
// kernel: tpu_custom_call.1
= control target key start
LH: loop header
LB: loop body
LE: loop exit
PB: predicated region body
PF: predicated region fallthrough
CT: control target
= control target key end

     0   :  { %8 = vsyncpa [#allocation3], 0  ;;  %s836_s0 = inlined_call_operand.hbm [shape: f32[2,4,256], index: 0, kind: input, shape index: {}]   ;;  %s837_s1 = inlined_call_operand.vmem [shape: f32[12], index: 1, kind: input, shape index: {}]   ;;  %s838_s2 = inlined_call_operand.vmem [shape: f32[3], index: 2, kind: input, shape index: {}]   ;;  %s839_s3 = inlined_call_operand.vmem [shape: f32[2,3,256], index: 3, kind: output, shape index: {}]  }
   0x1   :  { %10 = vsyncpa [#allocation3 + $0x1], 0 }
   0x2   :  { %11 = vsyncpa [#allocation4], 0 }
   0x3   :  { %12 = vsyncpa [#allocation7], 0  ;;  %s685_s12 = smov 0   ;;  %s687_s13 = smov 0  }
   0x4   :  { %s689_s14 = smov 0   ;;  %s691_s15 = smov 0  }
   0x5   :  { %s693_s16 = smov 0   ;;  %s695_s17 = smov 0  }
   0x6 LB: > { %s431_s18 = sadd.s32 4294967295, %s660_s17   ;;  %p52_p0 = scmp.ne.s32.totalorder %s644_s13, %s640_s12  ;;  %s660_s17 = sphi %s695_s17, %s18_s17   ;;  %s656_s16 = sphi %s693_s16, %s859_s16   ;;  %s652_s15 = sphi %s691_s15, %s858_s15   ;;  %s648_s14 = sphi %s689_s14, %s857_s14   ;;  %s644_s13 = sphi %s687_s13, %s856_s13   ;;  %s640_s12 = sphi %s685_s12, %s855_s12  }
   0x7   : > { %p715_p1 = scmp.eq.s32.totalorder %s431_s18, 0  ;;  %p433_p2 = scmp.ge.s32.totalorder %s660_s17, 1 }
   0x8   : > { %p133_p3 = scmp.lt.s32.totalorder %s660_s17, 3  ;;  %s146_s23 = sshll.u32 %s837_s1, 4  ;;  %s147_s23 = int_to_ptr.vmem [resolvable:$true] %s146_s23 }
   0x9   : > { %s844_s19 = scalar_select %p715_p1, 1, 0 }
   0xa   : > { %p723_p4 = por %p715_p1, %p52_p0  ;;  %p730_p5 = pnand %p433_p2, %p133_p3 }
   0xb   : > { %s157_s27 = sshll.u32 %s838_s2, 4  ;;  %s544_s29 = scalar_lea.vmem %s147_s23, 16  ;;  %s158_s27 = int_to_ptr.vmem [resolvable:$true] %s157_s27 }
   0xc   : > { %s845_s20 = scalar_select %p723_p4, 1, 0 }
   0xd   : > { %s846_s24 = scalar_select %p730_p5, 1, 0 }
   0xe   : > { %p478_p6 = pneg %p730_p5  ;;  %p545_p8 = scmp.ne.s32.totalorder %s147_s23, %s544_s29 }
   0xf   : > { %p552_p12 = scmp.lt.s32.totalorder %s147_s23, %s147_s23  ;;  %p553_p13 = scmp.lt.s32.totalorder %s544_s29, %s544_s29 }
  0x10   : > { %p741_p7 = pnand %p478_p6, %p715_p1 }
  0x11   : > { %p554_p0 = por %p553_p13, %p552_p12 }
  0x12   : > { %p546_p9 = pneg %p741_p7 }
  0x14   : > { %p547_p10 = pnand %p546_p9, %p545_p8 }
  0x16   : > { %p548_p11 = pneg %p547_p10 }
  0x18   : > { %p555_p2 = pnand %p554_p0, %p548_p11 }
  0x1a   : > { %558 = shalt.err (!%p555_p2)
}
  0x1b   : > { %s662_s30 = smov [#allocation5]   ;;  %s559_s4 = scalar_lea.vmem %s158_s27, 16 }
  0x1c   : > { %481 = dma.vmem_to_smem (!%p741_p7), %s147_s23, 16, %s662_s30, [#allocation4]  }
  0x1d   : > { %p560_p3 = scmp.ne.s32.totalorder %s158_s27, %s559_s4  ;;  %p567_p4 = scmp.lt.s32.totalorder %s158_s27, %s158_s27 }
  0x1e   : > { %p568_p5 = scmp.lt.s32.totalorder %s559_s4, %s559_s4 }
  0x1f   : > { %p562_p6 = pnand %p560_p3, %p546_p9 }
  0x20   : > { %p569_p8 = por %p568_p5, %p567_p4 }
  0x21   : > { %p563_p1 = pneg %p562_p6 }
  0x23   : > { %p570_p10 = pnand %p569_p8, %p563_p1 }
  0x25   : > { %573 = shalt.err (!%p570_p10)
}
  0x26   : > { %s663_s5 = smov [#allocation6]   ;;  %s30_s6 = sadd.s32 1, %s656_s16 }
  0x27   : > { %484 = dma.vmem_to_smem (!%p741_p7), %s158_s27, 16, %s663_s5, [#allocation7]  }
  0x28   : > { %s39_s7 = sadd.s32 1, %s648_s14  ;;  %p32_p9 = scmp.ge.s32.totalorder %s30_s6, 2 }
  0x29   : > { %p46_p1 = scmp.ne.s32.totalorder %s648_s14, %s644_s13  ;;  %p47_p4 = scmp.eq.s32.totalorder %s660_s17, 0 }
  0x2a   : > { %p491_p5 = scmp.lt.s32.totalorder %s660_s17, 2  ;;  %s861_s6 = smov (%p32_p9, %s30_s6), 0 }
  0x2b   : > { %p48_p11 = por %p47_p4, %p46_p1  ;;  %s168_s8 = sand.u32 1, %s648_s14  }
  0x2c   : > { %s34_s9 = ssub.s32 %s656_s16, %s861_s6  ;;  %s437_s10 = sshll.u32 %s168_s8, 3 }
  0x2d   : > { %p37_p12 = scmp.eq.s32.totalorder %s34_s9, 0  ;;  %s466_s11 = sshll.u32 %s656_s16, 7 }
  0x2e   : > { %s180_s22 = scalar_lea.hbm %s836_s0, %s466_s11  ;;  %s172_s23 = scalar_lea.vmem [#allocation2], %s437_s10 }
  0x2f   : > { %s764_s12 = scalar_select %p37_p12, %s648_s14, %s39_s7  }
  0x30   : > { %s182_s25 = sshll.u32 %s172_s23, 4  ;;  %p771_p7 = pnand %p491_p5, %p48_p11  ;;  %s183_s25 = int_to_ptr.vmem [resolvable:$true] %s182_s25 }
  0x31   : > { %s169_s27 = scalar_lea.sflag [#allocation3], %s168_s8  ;;  %s587_s28 = scalar_lea.vmem %s183_s25, 128 }
  0x32   : > { %p576_p13 = pneg %p771_p7  ;;  %p588_p0 = scmp.ne.s32.totalorder %s183_s25, %s587_s28 }
  0x33   : > { %s664_s29 = smov [#allocation2]  }
  0x34   : > { %p590_p2 = pnand %p588_p0, %p576_p13  ;;  %s592_s30 = sshll.u32 %s664_s29, 4  ;;  %s593_s30 = int_to_ptr.vmem [resolvable:$false] %s592_s30 }
  0x35   : > { %s594_s4 = scalar_lea.vmem %s593_s30, 256  ;;  %p595_p6 = scmp.lt.s32.totalorder %s183_s25, %s593_s30 }
  0x36   : > { %p591_p3 = pneg %p590_p2  ;;  %p596_p8 = scmp.lt.s32.totalorder %s594_s4, %s587_s28 }
  0x38   : > { %p597_p10 = por %p596_p8, %p595_p6 }
  0x3a   : > { %p598_p9 = pnand %p597_p10, %p591_p3 }
  0x3c   : > { %601 = shalt.err (!%p598_p9)
}
  0x3d   : > { %488 = dma.hbm_to_vmem [thread:$0]  (!%p771_p7), %s180_s22, 128, %s183_s25, %s169_s27  }
  0x3e   : > { %p849_p1 = scmp.ne.s32.totalorder %s846_s24, 0 }
  0x3f   : > { %s193_s5 = sand.u32 (!%p849_p1), 1, %s644_s13   ;;  %p850_p4 = scmp.ne.s32.totalorder (!%p849_p1), %s845_s20, 0 }
  0x40   : > { %191 = sbr.rel (%p849_p1) target bundleno = 106 (0x6a), region = 32  ;;  %s441_s7 = sshll.u32 (!%p849_p1), %s193_s5, 3 }
  0x41   : > { %s194_s8 = scalar_lea.sflag (!%p849_p1), [#allocation3], %s193_s5  ;;  %s197_s9 = scalar_lea.vmem (!%p849_p1), [#allocation2], %s441_s7 }
  0x45   : > { %627 = dma.done.wait (%p850_p4), %s194_s8, 128  }
  0x46   : > { %629 = vsyncadd (%p850_p4), %s194_s8, 4294967168  ;;  %p851_p5 = scmp.ne.s32.totalorder %s844_s19, 0 }
  0x48   : > { %631 = dma.done.wait (%p851_p5), [#allocation4], 16  }
  0x49   : > { %633 = vsyncadd (%p851_p5), [#allocation4], 4294967280 }
  0x4a   : > { %635 = dma.done.wait (%p851_p5), [#allocation7], 16  }
  0x4b   : > { %637 = vsyncadd (%p851_p5), [#allocation7], 4294967280 }
  0x4c   : > { %210 = sfence }
  0x4d   : > { %p235_p11 = scmp.lt.s32.totalorder %s652_s15, 1  ;;  %s251_s24 = sld [smem:[#allocation5]]  ;;  %v244_v0 = vld [vmem:[%s197_s9] ss:$4 sm:$0x3]  ;;  %v269_v13 = vlaneseq }
  0x4e   : > { %s449_s20 = sld [smem:[#allocation5 + $0x1]]  ;;  %v446_v2 = vld [vmem:[%s197_s9 + $0x1] ss:$4 sm:$0x3] }
  0x4f   : > { %s863_s15 = smov (!%p235_p11, %s652_s15), 1  ;;  %s450_s10 = sld [smem:[#allocation5 + $0x2]]  ;;  %v447_v3 = vld [vmem:[%s197_s9 + $0x2] ss:$4 sm:$0x3]  ;;  %vm807_vm0 = vcmp.lt.s32.totalorder %v269_v13, 256 }
  0x50   : > { %s451_s11 = sld [smem:[#allocation5 + $0x3]]  ;;  %v448_v5 = vld [vmem:[%s197_s9 + $0x3] ss:$4 sm:$0x3]  ;;  %s467_s28 = sshll.u32 %s863_s15, 3 }
  0x51   : > { %s798_s18 = sld [smem:[#allocation6]]  ;;  %s242_s7 = scalar_lea.vmem %s839_s3, %s467_s28 }
  0x52   : > { %s452_s21 = sld [smem:[#allocation5 + $0x4]] }
  0x53   : > { %v252_v1 = vstv %s251_s24  ;;  %s453_s19 = sld [smem:[#allocation5 + $0x5]] }
  0x54   : > { %v253_v4 = vmul.f32 %v252_v1, %v244_v0  ;;  %v255_v6 = vstv %s449_s20  ;;  %s454_s22 = sld [smem:[#allocation5 + $0x6]] }
  0x55   : > { %v256_v7 = vmul.f32 %v446_v2, %v255_v6  ;;  %v259_v8 = vstv %s450_s10  ;;  %s455_s23 = sld [smem:[#allocation5 + $0x7]] }
  0x56   : > { %v260_v9 = vmul.f32 %v447_v3, %v259_v8  ;;  %v263_v10 = vstv %s451_s11  ;;  %s800_s25 = sld [smem:[#allocation6 + $0x1]] }
  0x57   : > { %v257_v11 = vadd.f32 %v256_v7, %v253_v4  ;;  %v264_v12 = vmul.f32 %v448_v5, %v263_v10  ;;  %s458_s26 = sld [smem:[#allocation5 + $0x8]]  ;;  %v267_v18 = vstv %s798_s18 }
  0x58   : > { %v275_v14 = vstv %s452_s21  ;;  %s459_s27 = sld [smem:[#allocation5 + $0x9]] }
  0x59   : > { %v261_v15 = vadd.f32 %v260_v9, %v257_v11  ;;  %v276_v16 = vmul.f32 %v275_v14, %v244_v0  ;;  %v278_v17 = vstv %s453_s19  ;;  %s460_s29 = sld [smem:[#allocation5 + $0xa]] }
  0x5a   : > { %v279_v19 = vmul.f32 %v446_v2, %v278_v17  ;;  %v282_v20 = vstv %s454_s22  ;;  %s461_s30 = sld [smem:[#allocation5 + $0xb]] }
  0x5b   : > { %v265_v21 = vadd.f32 %v264_v12, %v261_v15  ;;  %v283_v22 = vmul.f32 %v447_v3, %v282_v20  ;;  %v286_v23 = vstv %s455_s23  ;;  %s462_s15 = sld [smem:[#allocation6 + $0x2]] }
  0x5c   : > { %v280_v25 = vadd.f32 %v279_v19, %v276_v16  ;;  %v287_v26 = vmul.f32 %v448_v5, %v286_v23  ;;  %v290_v32 = vstv %s800_s25 }
  0x5d   : > { %v268_v27 = vadd.f32 %v267_v18, %v265_v21  ;;  %v295_v28 = vstv %s458_s26 }
  0x5e   : > { %v284_v29 = vadd.f32 %v283_v22, %v280_v25  ;;  %v296_v30 = vmul.f32 %v295_v28, %v244_v0  ;;  %v298_v31 = vstv %s459_s27 }
  0x5f   : > { %273 = vst.msk [vmem:[%s242_s7] ss:$4 sm:$0x3] %vm807_vm0, %v268_v27  ;;  %v299_v33 = vmul.f32 %v446_v2, %v298_v31  ;;  %v302_v34 = vstv %s460_s29 }
  0x60   : > { %v288_v35 = vadd.f32 %v287_v26, %v284_v29  ;;  %v303_v36 = vmul.f32 %v447_v3, %v302_v34  ;;  %v306_v37 = vstv %s461_s30 }
  0x61   : > { %v300_v38 = vadd.f32 %v299_v33, %v296_v30  ;;  %v307_v39 = vmul.f32 %v448_v5, %v306_v37  ;;  %v310_v42 = vstv %s462_s15 }
  0x62   : > { %v291_v40 = vadd.f32 %v290_v32, %v288_v35 }
  0x63   : > { %v304_v41 = vadd.f32 %v303_v36, %v300_v38 }
  0x64   : > { %457 = vst.msk [vmem:[%s242_s7 + $0x1] ss:$4 sm:$0x3] %vm807_vm0, %v291_v40 }
  0x65   : > { %v308_v43 = vadd.f32 %v307_v39, %v304_v41 }
  0x67   : > { %v311_v44 = vadd.f32 %v310_v42, %v308_v43 }
  0x69   : > { %463 = vst.msk [vmem:[%s242_s7 + $0x2] ss:$4 sm:$0x3] %vm807_vm0, %v311_v44 }
  0x6a PF: > { %s18_s17 = sadd.s32 1, %s660_s17   ;;  %s854_s8 = smov %s764_s12 }
  0x6b   : > { %p15_p12 = scmp.ge.s32.totalorder %s18_s17, 4   ;;  %s855_s12 = smov %s644_s13 }
  0x6c   : > { %s856_s13 = smov %s648_s14  ;;  %s857_s14 = smov %s854_s8 }
  0x6d   : > { %s858_s15 = smov %s656_s16  ;;  %s859_s16 = smov %s861_s6 }
  0x6e   :  { %17 = sbr.rel (!%p15_p12) target bundleno = 6 (0x6), region = 86 }
  0x73   :  { %344 = vsyncpa [#allocation3], 1 }
  0x74   :  { %346 = vsyncpa [#allocation3 + $0x1], 1 }
  0x75   :  { %347 = vsyncpa [#allocation4], 1 }
  0x76   :  { %349 = vsyncpa [#allocation4 + $0x1], 1 }
  0x77   :  { %350 = vsyncpa [#allocation7], 1 }

</bundles_post_ra>
